<compile_context>
chip_gen: v5e
topology: v5e:2x2
jax: 0.10.0
libtpu: 0.0.40
codegen_flags: <defaults>
</compile_context>

<pallas_src>
import jax
import jax.numpy as jnp
from jax.experimental import pallas as pl
from jax.experimental.pallas import tpu as pltpu


NEG_INF = -1e30  # additive mask for conv positions past each branch's valid range (f32 only!)


# ----------------------------- Pallas kernel ------------------------------- #

def cnn_text_kernel(x_ref, w_ref, mb_ref, fcw_ref, fcb_ref, o_ref):
    """Fused conv(all Ks) + bias + ReLU + max-pool + FC for one batch tile.

    x_ref:   (TN, LP, D)   bf16  embedded tokens, sequence zero-padded to LP = L + Kmax - 1
    w_ref:   (Kmax, D, FP) bf16  tap-stacked conv weights, FP = roundup(len(Ks)*Co, 128)
    mb_ref:  (L, FP)       f32   fused conv-bias + validity mask (bias where valid, -1e30 otherwise)
    fcw_ref: (FP, CP)      bf16  fc1 weight (padded rows/cols are zero), CP = roundup(C, 128)
    fcb_ref: (1, CP)       f32   fc1 bias (lane-padded)
    o_ref:   (TN, CP)      f32   lane-padded logits
    """
    tn, lp, d = x_ref.shape
    kmax, _, fp = w_ref.shape
    L = mb_ref.shape[0]                       # = lp - kmax + 1

    # Conv over every kernel size as Kmax accumulating tap matmuls on shifted
    # in-VMEM slices -- the sliding windows are never materialized in HBM.
    z = jnp.dot(x_ref[:, 0:L, :].reshape(tn * L, d), w_ref[0],
                preferred_element_type=jnp.float32)                    # (TN*L, FP) f32
    for k in range(1, kmax):                                           # static, tiny trip count
        xk = x_ref[:, k:k + L, :].reshape(tn * L, d)
        z = z + jnp.dot(xk, w_ref[k], preferred_element_type=jnp.float32)

    z = z.reshape(tn, L, fp) + mb_ref[...]    # + bias, invalid positions pushed to ~-1e30
    z = jnp.maximum(z, 0.0)                   # ReLU (invalid positions / pad columns -> 0)
    pooled = jnp.max(z, axis=1)               # max-pool over sequence -> (TN, FP)

    # fc1 on the pooled features, single lane-dense store.
    o_ref[...] = (jnp.dot(pooled.astype(fcw_ref.dtype), fcw_ref[...],
                          preferred_element_type=jnp.float32)
                  + fcb_ref[...])


# ------------------------------ wrapper glue -------------------------------- #

def _round_up(x, m):
    return (x + m - 1) // m * m


def _hw_info():
    """(vmem_capacity_bytes, has_two_tensorcores) with conservative fallbacks."""
    vmem_cap = 64 << 20        # conservative default = v7x physical VMEM
    two_tc = False
    try:
        vmem_cap = int(pltpu.get_tpu_info().vmem_capacity_bytes)
    except Exception:
        pass
    try:
        two_tc = "v7" in jax.devices()[0].device_kind.lower()
    except Exception:
        pass
    return vmem_cap, two_tc


def _pack_params(params, L, compute_dtype):
    """Tap-stacked conv weights, fused bias+mask, and lane-padded FC tensors."""
    Ks = params["Ks"]
    D = params["embed"].shape[1]
    Co = params["conv_b"][Ks[0]].shape[1]
    C = params["fc_b"].shape[1]
    kmax = max(Ks)
    F = len(Ks) * Co
    FP = _round_up(F, 128)     # lane-dense conv output / pool / FC contraction
    CP = _round_up(C, 128)     # lane-dense logits store

    # (Kmax, D, FP): taps past each branch's K (and padded columns) stay zero.
    w = jnp.zeros((kmax, D, FP), jnp.float32)
    for b, K in enumerate(Ks):
        w = w.at[:K, :, b * Co:(b + 1) * Co].set(params["conv_w"][K])
    w_stk = w.astype(compute_dtype)

    # Fused conv-bias + validity mask (f32: -1e30 would overflow bf16).  ReLU then
    # maps invalid/pad entries to 0, which never wins the max because every valid
    # post-ReLU value is >= 0.
    pos = jnp.arange(L)[:, None]                                   # (L, 1)
    mb = jnp.full((L, FP), NEG_INF, jnp.float32)
    for b, K in enumerate(Ks):
        T = L - K + 1
        col = jnp.where(pos < T, params["conv_b"][K], NEG_INF)     # (L, Co)
        mb = mb.at[:, b * Co:(b + 1) * Co].set(col)

    fcw = jnp.zeros((FP, CP), jnp.float32).at[:F, :C].set(params["fc_w"]).astype(compute_dtype)
    fcb = jnp.zeros((1, CP), jnp.float32).at[:, :C].set(params["fc_b"])
    return w_stk, mb, fcw, fcb, kmax, F, FP, C, CP


def _pick_batch_tile(N, LP, L, D, FP, CP, kmax, act_bytes):
    """Largest batch tile whose FULL VMEM footprint fits a hardware-derived budget."""
    vmem_cap, two_tc = _hw_info()
    vmem_limit = min(vmem_cap * 3 // 4, 96 << 20)   # ~96 MiB on 128 MiB parts, ~48 MiB on v7x
    budget = vmem_limit // 2                        # headroom for compiler scratch

    resident = (kmax * D * FP + FP * CP) * act_bytes + L * FP * 4 + CP * 4
    per_row = (2 * LP * D * act_bytes               # double-buffered activation block
               + 2 * CP * 4                         # double-buffered f32 output block
               + L * FP * 4                         # f32 conv accumulator
               + L * D * act_bytes)                 # one live shifted tap slice
    tn = (budget - resident) // per_row
    tn = int(max(8, min(tn, 1024)))

    if two_tc:
        # Keep >= 2 grid steps per TensorCore so dimension_semantics=("parallel",)
        # can actually shard the batch across both cores (v7x).
        tn = min(tn, max(8, _round_up(-(-N // 4), 8)))

    if tn >= N:
        tn = N                                      # single full block
    else:
        tn = max(8, tn // 8 * 8)                    # tiled: keep output block sublane-aligned
    return tn, int(vmem_limit)


def cnn_text_forward(tokens, params, *, compute_dtype=jnp.bfloat16):
    """Inference forward pass of CNN_Text (dropout == identity, static branch == identity)."""
    # nn.Embedding lookup (gather) kept in plain JAX.
    # TODO(synk): fuse the gather via PrefetchScalarGridSpec (token ids as scalar
    # prefetch + per-row DMA from the HBM embedding table) to avoid materializing
    # the (N, L, D) activations in HBM.
    x = jnp.take(params["embed"], tokens, axis=0)                  # (N, L, D) f32
    N, L, D = x.shape

    w_stk, maskbias, fcw, fcb, kmax, F, FP, C, CP = _pack_params(params, L, compute_dtype)

    LP = L + kmax - 1
    # Only pad the sequence tail by Kmax-1 rows (no Kmax-x im2col blow-up in HBM).
    x_pad = jnp.pad(x, ((0, 0), (0, kmax - 1), (0, 0))).astype(compute_dtype)

    TN, vmem_limit = _pick_batch_tile(N, LP, L, D, FP, CP, kmax,
                                      jnp.dtype(compute_dtype).itemsize)
    grid = (pl.cdiv(N, TN),)

    out = pl.pallas_call(
        cnn_text_kernel,
        out_shape=jax.ShapeDtypeStruct((N, CP), jnp.float32),
        grid=grid,
        in_specs=[
            # TODO(synk): at production shapes (HBM-bound, short per-tile compute)
            # consider pipeline_mode=pl.Buffered(3) on this activation block.
            pl.BlockSpec((TN, LP, D), lambda i: (i, 0, 0)),    # batch-tiled activations
            pl.BlockSpec((kmax, D, FP), lambda i: (0, 0, 0)),  # tap-stacked conv weights (resident)
            pl.BlockSpec((L, FP), lambda i: (0, 0)),           # fused conv-bias + validity mask
            pl.BlockSpec((FP, CP), lambda i: (0, 0)),          # fc1 weight (lane-padded)
            pl.BlockSpec((1, CP), lambda i: (0, 0)),           # fc1 bias (lane-padded)
        ],
        out_specs=pl.BlockSpec((TN, CP), lambda i: (i, 0)),
        compiler_params=pltpu.CompilerParams(
            dimension_semantics=("parallel",),                 # batch tiles split across v7x's 2 TCs
            vmem_limit_bytes=vmem_limit,
        ),
    )(x_pad, w_stk, maskbias, fcw, fcb)

    return out[:, :C]                                          # strip lane padding -> (N, C)


# -------------------------- pure-JAX reference ------------------------------ #

def cnn_text_reference(tokens, params):
    """f32 reference matching the PyTorch forward at inference."""
    x = jnp.take(params["embed"], tokens, axis=0)
    feats = []
    for K in params["Ks"]:
        w = params["conv_w"][K]                                # (K, D, Co)
        T = x.shape[1] - K + 1
        windows = jnp.stack([x[:, k:k + T, :] for k in range(K)], axis=2)   # (N, T, K, D)
        conv = jnp.einsum("ntkd,kdc->ntc", windows, w) + params["conv_b"][K]
        feats.append(jnp.max(jax.nn.relu(conv), axis=1))       # (N, Co)
    f = jnp.concatenate(feats, axis=1)
    return f @ params["fc_w"] + params["fc_b"]


# ------------------------- deterministic parameters ------------------------- #

def init_params(key, *, V, D, Co, Ks, C):
    keys = jax.random.split(key, 3 + 2 * len(Ks))
    params = {"Ks": tuple(Ks)}
    params["embed"] = jax.random.normal(keys[0], (V, D), jnp.float32)      # nn.Embedding: N(0,1)
    params["conv_w"], params["conv_b"] = {}, {}
    for i, K in enumerate(Ks):
        fan_in, fan_out = K * D, Co
        std = (2.0 / (fan_in + fan_out)) ** 0.5                            # xavier_normal, gain=1
        # PyTorch conv weight (Co, 1, K, D) stored transposed as (K, D, Co).
        params["conv_w"][K] = std * jax.random.normal(keys[1 + 2 * i], (K, D, Co), jnp.float32)
        params["conv_b"][K] = 0.1 * jax.random.normal(keys[2 + 2 * i], (1, Co), jnp.float32)
    F = len(Ks) * Co
    std = 1.0 / (F ** 0.5)
    # PyTorch Linear weight (C, F) stored as W^T = (F, C).
    params["fc_w"] = std * jax.random.normal(keys[1 + 2 * len(Ks)], (F, C), jnp.float32)
    params["fc_b"] = 0.1 * jax.random.normal(keys[2 + 2 * len(Ks)], (1, C), jnp.float32)
    return params


# ---------------------------------- main ------------------------------------ #

if __name__ == "__main__":
    # Small deterministic config consistent with the module:
    #   embed_num V=100, embed_dim D=32, kernel_num Co=8, kernel_sizes Ks=(3,4,5),
    #   class_num C=4, batch N=2, sequence length L=16.
    V, D, Co, C = 100, 32, 8, 4
    Ks = (3, 4, 5)
    N, L = 2, 16

    key = jax.random.PRNGKey(0)
    k_tok, k_par = jax.random.split(key)
    tokens = jax.random.randint(k_tok, (N, L), 0, V, dtype=jnp.int32)
    params = init_params(k_par, V=V, D=D, Co=Co, Ks=Ks, C=C)

    logits = cnn_text_forward(tokens, params)
    jax.block_until_ready(logits)
    assert logits.shape == (N, C) and logits.dtype == jnp.float32

    ref = cnn_text_reference(tokens, params)
    assert jnp.allclose(logits, ref, rtol=1e-1, atol=1e-1), (logits, ref)
    print("KERNEL_OK")
</pallas_src>

<mosaic_0001>
module attributes {stable_mosaic.version = 11 : i64} {
  func.func @cnn_text_kernel(%arg0: i32, %arg1: memref<2x20x32xbf16, #tpu.memory_space<vmem>>, %arg2: memref<5x32x128xbf16, #tpu.memory_space<vmem>>, %arg3: memref<16x128xf32, #tpu.memory_space<vmem>>, %arg4: memref<128x128xbf16, #tpu.memory_space<vmem>>, %arg5: memref<1x128xf32, #tpu.memory_space<vmem>>, %arg6: memref<2x128xf32, #tpu.memory_space<vmem>>) attributes {dimension_semantics = [#tpu.dimension_semantics<parallel>], iteration_bounds = array<i64: 1>, scalar_prefetch = 0 : i64, scratch_operands = 0 : i64, tpu.core_type = #tpu.core_type<tc>, window_params = [{transform_indices = @transform_0, window_bounds = array<i64: 2, 20, 32>}, {pipeline_mode = #tpu.pipeline_mode<synchronous>, transform_indices = @transform_1, window_bounds = array<i64: 5, 32, 128>}, {pipeline_mode = #tpu.pipeline_mode<synchronous>, transform_indices = @transform_2, window_bounds = array<i64: 16, 128>}, {pipeline_mode = #tpu.pipeline_mode<synchronous>, transform_indices = @transform_3, window_bounds = array<i64: 128, 128>}, {pipeline_mode = #tpu.pipeline_mode<synchronous>, transform_indices = @transform_4, window_bounds = array<i64: 1, 128>}, {transform_indices = @transform_5, window_bounds = array<i64: 2, 128>}]} {
    %c0 = arith.constant 0 : index
    %c0_0 = arith.constant 0 : index
    %c0_1 = arith.constant 0 : index
    %0 = vector.load %arg1[%c0, %c0_0, %c0_1] : memref<2x20x32xbf16, #tpu.memory_space<vmem>>, vector<2x16x32xbf16>
    %1 = vector.shape_cast %0 : vector<2x16x32xbf16> to vector<32x32xbf16>
    %c0_2 = arith.constant 0 : index
    %c0_3 = arith.constant 0 : index
    %c0_4 = arith.constant 0 : index
    %2 = vector.load %arg2[%c0_2, %c0_3, %c0_4] : memref<5x32x128xbf16, #tpu.memory_space<vmem>>, vector<1x32x128xbf16>
    %3 = vector.shape_cast %2 : vector<1x32x128xbf16> to vector<32x128xbf16>
    %cst = arith.constant dense<0.000000e+00> : vector<32x128xf32>
    %4 = tpu.matmul %1, %3, %cst {dimension_numbers = #tpu.dot_dimension_numbers<[1], [0], [0], [1], [0, 0, 1, 1], [], []>} : vector<32x32xbf16>, vector<32x128xbf16>, vector<32x128xf32> -> vector<32x128xf32>
    %c0_5 = arith.constant 0 : index
    %c1 = arith.constant 1 : index
    %c0_6 = arith.constant 0 : index
    %5 = vector.load %arg1[%c0_5, %c1, %c0_6] : memref<2x20x32xbf16, #tpu.memory_space<vmem>>, vector<2x16x32xbf16>
    %6 = vector.shape_cast %5 : vector<2x16x32xbf16> to vector<32x32xbf16>
    %c1_7 = arith.constant 1 : index
    %c0_8 = arith.constant 0 : index
    %c0_9 = arith.constant 0 : index
    %7 = vector.load %arg2[%c1_7, %c0_8, %c0_9] : memref<5x32x128xbf16, #tpu.memory_space<vmem>>, vector<1x32x128xbf16>
    %8 = vector.shape_cast %7 : vector<1x32x128xbf16> to vector<32x128xbf16>
    %cst_10 = arith.constant dense<0.000000e+00> : vector<32x128xf32>
    %9 = tpu.matmul %6, %8, %cst_10 {dimension_numbers = #tpu.dot_dimension_numbers<[1], [0], [0], [1], [0, 0, 1, 1], [], []>} : vector<32x32xbf16>, vector<32x128xbf16>, vector<32x128xf32> -> vector<32x128xf32>
    %10 = arith.addf %4, %9 : vector<32x128xf32>
    %c0_11 = arith.constant 0 : index
    %c2 = arith.constant 2 : index
    %c0_12 = arith.constant 0 : index
    %11 = vector.load %arg1[%c0_11, %c2, %c0_12] : memref<2x20x32xbf16, #tpu.memory_space<vmem>>, vector<2x16x32xbf16>
    %12 = vector.shape_cast %11 : vector<2x16x32xbf16> to vector<32x32xbf16>
    %c2_13 = arith.constant 2 : index
    %c0_14 = arith.constant 0 : index
    %c0_15 = arith.constant 0 : index
    %13 = vector.load %arg2[%c2_13, %c0_14, %c0_15] : memref<5x32x128xbf16, #tpu.memory_space<vmem>>, vector<1x32x128xbf16>
    %14 = vector.shape_cast %13 : vector<1x32x128xbf16> to vector<32x128xbf16>
    %cst_16 = arith.constant dense<0.000000e+00> : vector<32x128xf32>
    %15 = tpu.matmul %12, %14, %cst_16 {dimension_numbers = #tpu.dot_dimension_numbers<[1], [0], [0], [1], [0, 0, 1, 1], [], []>} : vector<32x32xbf16>, vector<32x128xbf16>, vector<32x128xf32> -> vector<32x128xf32>
    %16 = arith.addf %10, %15 : vector<32x128xf32>
    %c0_17 = arith.constant 0 : index
    %c3 = arith.constant 3 : index
    %c0_18 = arith.constant 0 : index
    %17 = vector.load %arg1[%c0_17, %c3, %c0_18] : memref<2x20x32xbf16, #tpu.memory_space<vmem>>, vector<2x16x32xbf16>
    %18 = vector.shape_cast %17 : vector<2x16x32xbf16> to vector<32x32xbf16>
    %c3_19 = arith.constant 3 : index
    %c0_20 = arith.constant 0 : index
    %c0_21 = arith.constant 0 : index
    %19 = vector.load %arg2[%c3_19, %c0_20, %c0_21] : memref<5x32x128xbf16, #tpu.memory_space<vmem>>, vector<1x32x128xbf16>
    %20 = vector.shape_cast %19 : vector<1x32x128xbf16> to vector<32x128xbf16>
    %cst_22 = arith.constant dense<0.000000e+00> : vector<32x128xf32>
    %21 = tpu.matmul %18, %20, %cst_22 {dimension_numbers = #tpu.dot_dimension_numbers<[1], [0], [0], [1], [0, 0, 1, 1], [], []>} : vector<32x32xbf16>, vector<32x128xbf16>, vector<32x128xf32> -> vector<32x128xf32>
    %22 = arith.addf %16, %21 : vector<32x128xf32>
    %c0_23 = arith.constant 0 : index
    %c4 = arith.constant 4 : index
    %c0_24 = arith.constant 0 : index
    %23 = vector.load %arg1[%c0_23, %c4, %c0_24] : memref<2x20x32xbf16, #tpu.memory_space<vmem>>, vector<2x16x32xbf16>
    %24 = vector.shape_cast %23 : vector<2x16x32xbf16> to vector<32x32xbf16>
    %c4_25 = arith.constant 4 : index
    %c0_26 = arith.constant 0 : index
    %c0_27 = arith.constant 0 : index
    %25 = vector.load %arg2[%c4_25, %c0_26, %c0_27] : memref<5x32x128xbf16, #tpu.memory_space<vmem>>, vector<1x32x128xbf16>
    %26 = vector.shape_cast %25 : vector<1x32x128xbf16> to vector<32x128xbf16>
    %cst_28 = arith.constant dense<0.000000e+00> : vector<32x128xf32>
    %27 = tpu.matmul %24, %26, %cst_28 {dimension_numbers = #tpu.dot_dimension_numbers<[1], [0], [0], [1], [0, 0, 1, 1], [], []>} : vector<32x32xbf16>, vector<32x128xbf16>, vector<32x128xf32> -> vector<32x128xf32>
    %28 = arith.addf %22, %27 : vector<32x128xf32>
    %29 = vector.shape_cast %28 : vector<32x128xf32> to vector<2x16x128xf32>
    %c0_29 = arith.constant 0 : index
    %c0_30 = arith.constant 0 : index
    %30 = vector.load %arg3[%c0_29, %c0_30] : memref<16x128xf32, #tpu.memory_space<vmem>>, vector<16x128xf32>
    %31 = vector.shape_cast %30 : vector<16x128xf32> to vector<1x16x128xf32>
    %32 = vector.broadcast %31 : vector<1x16x128xf32> to vector<2x16x128xf32>
    %33 = arith.addf %29, %32 : vector<2x16x128xf32>
    %cst_31 = arith.constant 0.000000e+00 : f32
    %34 = vector.broadcast %cst_31 : f32 to vector<2x16x128xf32>
    %35 = arith.maximumf %33, %34 : vector<2x16x128xf32>
    %cst_32 = arith.constant dense<0xFF800000> : vector<2x128xf32>
    %36 = vector.multi_reduction <maximumf>, %35, %cst_32 [1] : vector<2x16x128xf32> to vector<2x128xf32>
    %37 = arith.truncf %36 : vector<2x128xf32> to vector<2x128xbf16>
    %c0_33 = arith.constant 0 : index
    %c0_34 = arith.constant 0 : index
    %38 = vector.load %arg4[%c0_33, %c0_34] : memref<128x128xbf16, #tpu.memory_space<vmem>>, vector<128x128xbf16>
    %cst_35 = arith.constant dense<0.000000e+00> : vector<2x128xf32>
    %39 = tpu.matmul %37, %38, %cst_35 {dimension_numbers = #tpu.dot_dimension_numbers<[1], [0], [0], [1], [0, 0, 1, 1], [], []>} : vector<2x128xbf16>, vector<128x128xbf16>, vector<2x128xf32> -> vector<2x128xf32>
    %c0_36 = arith.constant 0 : index
    %c0_37 = arith.constant 0 : index
    %40 = vector.load %arg5[%c0_36, %c0_37] : memref<1x128xf32, #tpu.memory_space<vmem>>, vector<1x128xf32>
    %41 = vector.broadcast %40 : vector<1x128xf32> to vector<2x128xf32>
    %42 = arith.addf %39, %41 : vector<2x128xf32>
    %c0_38 = arith.constant 0 : index
    %c0_39 = arith.constant 0 : index
    %43 = vector.load %arg6[%c0_38, %c0_39] : memref<2x128xf32, #tpu.memory_space<vmem>>, vector<2x128xf32>
    tpu.vector_store %arg6[%c0_38, %c0_39], %42 {strides = array<i32>} : memref<2x128xf32, #tpu.memory_space<vmem>>, vector<2x128xf32>,
    return
  }
  func.func @transform_0(%arg0: i32) -> (i32, i32, i32) {
    %c0_i32 = arith.constant 0 : i32
    %c0_i32_0 = arith.constant 0 : i32
    %c0_i32_1 = arith.constant 0 : i32
    return %arg0, %c0_i32, %c0_i32_0 : i32, i32, i32
  }
  func.func @transform_1(%arg0: i32) -> (i32, i32, i32) {
    %c0_i32 = arith.constant 0 : i32
    %c0_i32_0 = arith.constant 0 : i32
    %c0_i32_1 = arith.constant 0 : i32
    %c0_i32_2 = arith.constant 0 : i32
    return %c0_i32, %c0_i32_0, %c0_i32_1 : i32, i32, i32
  }
  func.func @transform_2(%arg0: i32) -> (i32, i32) {
    %c0_i32 = arith.constant 0 : i32
    %c0_i32_0 = arith.constant 0 : i32
    %c0_i32_1 = arith.constant 0 : i32
    return %c0_i32, %c0_i32_0 : i32, i32
  }
  func.func @transform_3(%arg0: i32) -> (i32, i32) {
    %c0_i32 = arith.constant 0 : i32
    %c0_i32_0 = arith.constant 0 : i32
    %c0_i32_1 = arith.constant 0 : i32
    return %c0_i32, %c0_i32_0 : i32, i32
  }
  func.func @transform_4(%arg0: i32) -> (i32, i32) {
    %c0_i32 = arith.constant 0 : i32
    %c0_i32_0 = arith.constant 0 : i32
    %c0_i32_1 = arith.constant 0 : i32
    return %c0_i32, %c0_i32_0 : i32, i32
  }
  func.func @transform_5(%arg0: i32) -> (i32, i32) {
    %c0_i32 = arith.constant 0 : i32
    %c0_i32_0 = arith.constant 0 : i32
    return %arg0, %c0_i32 : i32, i32
  }
}

</mosaic_0001>

<bundles_post_ra>
// kernel: tpu_custom_call.1
= control target key start
LH: loop header
LB: loop body
LE: loop exit
PB: predicated region body
PF: predicated region fallthrough
CT: control target
= control target key end

     0   :  { %10 = vsyncpa [#allocation3], 0  ;;  %s1001_s0 = inlined_call_operand.vmem [shape: bf16[2,20,32], index: 0, kind: input, shape index: {}]   ;;  %s1002_s1 = inlined_call_operand.hbm [shape: bf16[5,32,128], index: 1, kind: input, shape index: {}]   ;;  %s1003_s2 = inlined_call_operand.vmem [shape: f32[16,128], index: 2, kind: input, shape index: {}]   ;;  %s1004_s3 = inlined_call_operand.hbm [shape: bf16[128,128], index: 3, kind: input, shape index: {}]   ;;  %s1005_s4 = inlined_call_operand.vmem [shape: f32[1,128], index: 4, kind: input, shape index: {}]   ;;  %s1006_s5 = inlined_call_operand.hbm [shape: f32[2,128], index: 5, kind: output, shape index: {}]  }
   0x1   :  { %11 = vsyncpa [#allocation6], 0 }
   0x2   :  { %12 = vsyncpa [#allocation4], 0  ;;  %s19_s20 = sshll.u32 %s1002_s1, 4  ;;  %s798_s21 = smov [#allocation2]   ;;  %s20_s20 = int_to_ptr.hbm [resolvable:$true] %s19_s20 }
   0x3   :  { %s21_s22 = sshll.u32 %s798_s21, 4  ;;  %s34_s25 = sshll.u32 %s1004_s3, 4  ;;  %s22_s22 = int_to_ptr.vmem [resolvable:$true] %s21_s22  ;;  %s35_s25 = int_to_ptr.hbm [resolvable:$true] %s34_s25 }
   0x4   :  { %s799_s26 = smov 64   ;;  %s800_s27 = smov 4  }
   0x5   :  { %27 = dma.hbm_to_vmem [thread:$0]  %s20_s20, 1280, %s22_s22, [#allocation3], %s799_s26, %s799_s26, %s800_s27  }
   0x6   :  { %s801_s28 = smov [#allocation5]  }
   0x7   :  { %s36_s29 = sshll.u32 %s801_s28, 4  ;;  %s37_s29 = int_to_ptr.vmem [resolvable:$true] %s36_s29 }
   0x8   :  { %42 = dma.hbm_to_vmem [thread:$0]  %s35_s25, 1024, %s37_s29, [#allocation6], %s799_s26, %s799_s26, %s800_s27  }
   0x9   :  { %792 = dma.done.wait [#allocation3], 1280  }
   0xa   :  { %793 = vsyncadd [#allocation3], 4294966016 }
   0xb   :  { %794 = dma.done.wait [#allocation6], 1024  }
   0xc   :  { %795 = vsyncadd [#allocation6], 4294966272  ;;  %v695_v0 = vld [vmem:[#allocation2 + $0x8] sm:$0xff]  ;;  %v697_v1 = vld [vmem:[#allocation2 + $0x18] sm:$0xff]  ;;  %vm138_vm0 = vcmask 261120   ;;  %vm217_vm5 = vcmask 1042432  }
   0xd   :  { %vm64_vm1 = vsmask.f32 3328  ;;  %v694_v2 = vld [vmem:[#allocation2] sm:$0xff]  ;;  %v696_v3 = vld [vmem:[#allocation2 + $0x10] sm:$0xff]  ;;  %v56_v4 = vld [vmem:[%s1001_s0 + $0xc] sm:$0xf]  ;;  %198 = vmatpush.bf16.msra.mxu1 %v695_v0  ;;  %712 = vmatpush.bf16.msra.mxu2 %v697_v1 }
   0xe   :  { %vm65_vm2 = vsmask.f32 7440  ;;  %v845_v5 = vld [vmem:[%s1001_s0 + $0x10] sm:$0xf]  ;;  %v850_v6 = vld [vmem:[%s1001_s0 + $0x14] sm:$0x1]  ;;  %151 = vmatpush.bf16.msra.mxu0 %v697_v1 }
   0xf   :  { %v92_v7 = vshrl.u32 %v56_v4, 16  ;;  %v95_v8 = vshll.u32 %v56_v4, 16  ;;  %v101_v9 = vshll.u32 %v845_v5, 16  ;;  %v105_v10 = vshrl.u32 %v845_v5, 16  ;;  %v699_v12 = vld [vmem:[#allocation2 + $0x28] sm:$0xff]  ;;  %v692_v18 = vld [vmem:[%s1001_s0] sm:$0xff]  ;;  %vm884_vm7 = vmor %vm64_vm1, %vm65_vm2 }
  0x10   :  { %v111_v11 = vshll.u32 %v850_v6, 16  ;;  %v54_v13 = vld [vmem:[%s1001_s0] sm:$0xf]  ;;  %vm288_vm3 = vsmask.f32 2304  ;;  %v701_v22 = vld [vmem:[#allocation2 + $0x38] sm:$0xff] }
  0x11   :  { %vm289_vm4 = vsmask.f32 6416  ;;  %v94_v14 = vrot.slane %v92_v7, 4  ;;  %v97_v15 = vrot.slane %v95_v8, 5  ;;  %v861_v16 = vld [vmem:[%s1001_s0 + $0x4] sm:$0xf]  ;;  %199 = vmatpush.bf16.msra.mxu1 %v694_v2  ;;  %713 = vmatpush.bf16.msra.mxu2 %v696_v3 }
  0x12   :  { %v866_v17 = vld [vmem:[%s1001_s0 + $0x8] sm:$0x1]  ;;  %v103_v19 = vrot.slane %v101_v9, 5  ;;  %v107_v20 = vrot.slane %v105_v10, 4  ;;  %v68_v21 = vshrl.u32 %v54_v13, 16  ;;  %vm218_vm6 = vcmask 1046532   ;;  %152 = vmatpush.bf16.msra.mxu0 %v696_v3  ;;  %372 = vmatpush.bf16.msra.mxu3 %v701_v22  ;;  %vm910_vm9 = vmor %vm288_vm3, %vm289_vm4 }
  0x13   :  { %v98_v23 = vor.u32 %v97_v15, %v94_v14  ;;  %v71_v24 = vshll.u32 %v54_v13, 16  ;;  %v77_v25 = vshll.u32 %v861_v16, 16  ;;  %v81_v26 = vshrl.u32 %v861_v16, 16  ;;  %v880_v27 = vld [vmem:[%s1001_s0] sm:$0xe]  ;;  %v703_v34 = vld [vmem:[#allocation2 + $0x48] sm:$0xff]  ;;  %vm920_vm10 = vmor %vm217_vm5, %vm218_vm6 }
  0x14   :  { %v108_v29 = vor.u32 %v107_v20, %v103_v19  ;;  %v113_v30 = vrot.slane %v111_v11, 5  ;;  %v70_v31 = vrot.slane %v68_v21, 4  ;;  %v87_v32 = vshll.u32 %v866_v17, 16  ;;  %v698_v33 = vld [vmem:[#allocation2 + $0x20] sm:$0xff]  ;;  %v700_v39 = vld [vmem:[#allocation2 + $0x30] sm:$0xff]  ;;  %624 = vmatmul.msk.bf16.vlgmr.msra.gmra.mxu1 %vm138_vm0, %v692_v18  ;;  %s802_s8 = smov [#allocation7]  }
  0x15   :  { %269 = vmatpush.bf16.msrb.mxu2 %v699_v12  ;;  %v99_v35 = vrot.slane %v98_v23, 4  ;;  %v73_v36 = vrot.slane %v71_v24, 5  ;;  %v79_v37 = vrot.slane %v77_v25, 5  ;;  %v83_v38 = vrot.slane %v81_v26, 4  ;;  %v702_v44 = vld [vmem:[#allocation2 + $0x40] sm:$0xff]  ;;  %s585_s9 = sshll.u32 %s802_s8, 4  ;;  %s586_s9 = int_to_ptr.vmem [resolvable:$true] %s585_s9 }
  0x16   :  { %v109_v40 = vrot.slane %v108_v29, 4  ;;  %v89_v41 = vrot.slane %v87_v32, 5  ;;  %v292_v42 = vshrl.u32 %v880_v27, 16  ;;  %v295_v43 = vshll.u32 %v880_v27, 16  ;;  %447 = vmatpush.bf16.msrb.mxu0 %v703_v34  ;;  %v897_v48 = vld [vmem:[%s1001_s0 + $0x8] sm:$0x3]  ;;  %373 = vmatpush.bf16.msra.mxu3 %v700_v39 }
  0x17   :  { %vm395_vm8 = vcmask 1041408   ;;  %v104_v45 = vsel %vm884_vm7, %v99_v35, %v103_v19  ;;  %v74_v46 = vor.u32 %v73_v36, %v70_v31  ;;  %v84_v47 = vor.u32 %v83_v38, %v79_v37  ;;  %v389_v11 = vld [vmem:[%s1001_s0] sm:$0xc]  ;;  %v928_v18 = vld [vmem:[%s1001_s0 + $0xc] sm:$0xe]  ;;  %s587_s12 = sshll.u32 %s1006_s5, 4  ;;  %s588_s12 = int_to_ptr.hbm [resolvable:$true] %s587_s12 }
  0x18   :  { %v300_v49 = vrot.slane %v81_v26, 5  ;;  %v114_v50 = vsel %vm884_vm7, %v109_v40, %v113_v30  ;;  %v122_v51 = vunpack.c.l.b16 %v104_v45  ;;  %v294_v52 = vrot.slane %v292_v42, 5  ;;  %v287_v31 = vld [vmem:[%s1001_s0 + $0x14] sm:$0x3]  ;;  %v693_v34 = vld [vmem:[%s1001_s0 + $0xc] sm:$0xff] }
  0x19   :  { %270 = vmatpush.bf16.msrb.mxu2 %v698_v33  ;;  %v297_v53 = vrot.slane %v295_v43, 6  ;;  %v123_v54 = vunpack.c.l.b16 %v114_v50  ;;  %v75_v55 = vrot.slane %v74_v46, 4  ;;  %v85_v56 = vrot.slane %v84_v47, 4 }
  0x1a   :  { %v301_v57 = vrot.slane %v77_v25, 6  ;;  %v306_v59 = vshrl.u32 %v897_v48, 16  ;;  %v309_v60 = vshll.u32 %v897_v48, 16  ;;  %448 = vmatpush.bf16.msrb.mxu0 %v702_v44  ;;  %v626_v61 = vrot.slane %v880_v27, 9 }
  0x1b   :  { %v298_v58 = vor.u32 %v297_v53, %v294_v52  ;;  %v125_v62 = vpack.c.b16 %v123_v54, %v122_v51  ;;  %v80_v63 = vsel %vm884_vm7, %v75_v55, %v79_v37  ;;  %v90_v0 = vsel %vm884_vm7, %v85_v56, %v89_v41 }
  0x1c   :  { %v302_v2 = vor.u32 %v301_v57, %v300_v49  ;;  %v120_v3 = vunpack.c.l.b16 %v80_v63  ;;  %v121_v4 = vunpack.c.l.b16 %v90_v0  ;;  %v308_v8 = vrot.slane %v306_v59, 5 }
  0x1d   :  { %v299_v7 = vrot.slane %v298_v58, 4  ;;  %607 = vmatmul.msk.bf16.vlgmr.msra.gmra.mxu2 %vm138_vm0, %v125_v62  ;;  %v311_v13 = vrot.slane %v309_v60, 6  ;;  %v222_v15 = vrot.slane %v861_v16, 5  ;;  %vm396_vm11 = vcmask 1045508  }
  0x1e   :  { %v304_v12 = vrot.slane %v302_v2, 4  ;;  %v124_v19 = vpack.c.b16 %v121_v4, %v120_v3  ;;  %v225_v20 = vrot.slane %v866_v17, 5  ;;  %v400_v22 = vrot.slane %v861_v16, 6  ;;  %vm941_vm12 = vmor %vm395_vm8, %vm396_vm11 }
  0x1f   :  { %v303_v21 = vsel %vm910_vm9, %v299_v7, %v302_v2  ;;  %v312_v23 = vor.u32 %v311_v13, %v308_v8  ;;  %v224_v24 = vrot.slane %v222_v15, 4  ;;  %v223_v26 = vsel %vm920_vm10, %v626_v61, %v222_v15  ;;  %v390_v2 = vld [vmem:[%s1001_s0 + $0xc] sm:$0xc] }
  0x20   :  { %606 = vmatmul.msk.bf16.vlgmr.msra.gmra.mxu0 %vm138_vm0, %v124_v19  ;;  %v342_v25 = vunpack.c.l.b16 %v303_v21  ;;  %v648_v27 = vrot.slane %v389_v11, 10  ;;  %v315_v28 = vshrl.u32 %v928_v18, 16  ;;  %v402_v16 = vrot.slane %v400_v22, 4 }
  0x21   :  { %v313_v29 = vsel %vm910_vm9, %v304_v12, %v312_v23  ;;  %v403_v30 = vrot.slane %v897_v48, 6  ;;  %v318_v32 = vshll.u32 %v928_v18, 16  ;;  %v226_v35 = vsel %vm920_vm10, %v224_v24, %v225_v20 }
  0x22   :  { %v343_v33 = vunpack.c.l.b16 %v313_v29  ;;  %v317_v36 = vrot.slane %v315_v28, 5  ;;  %v239_v37 = vunpack.c.l.b16 %v223_v26  ;;  %v323_v39 = vrot.slane %v105_v10, 5 }
  0x23   :  { %v320_v38 = vrot.slane %v318_v32, 6  ;;  %v324_v40 = vrot.slane %v101_v9, 6  ;;  %v401_v42 = vsel %vm941_vm12, %v648_v27, %v400_v22  ;;  %v329_v43 = vshrl.u32 %v287_v31, 16  ;;  %v710_v27 = vld [vmem:[#allocation5 + $0x30] sm:$0xff]  ;;  %v708_v32 = vld [vmem:[#allocation5 + $0x20] sm:$0xff] }
  0x24   :  { %v346_v41 = vpack.c.b16 %v343_v33, %v342_v25  ;;  %v332_v44 = vshll.u32 %v287_v31, 16  ;;  %v240_v45 = vunpack.c.l.b16 %v226_v35  ;;  %v404_v46 = vsel %vm941_vm12, %v402_v16, %v403_v30  ;;  %625 = vmatmul.msk.bf16.gmra.mxu1 %vm138_vm0, %v693_v34  ;;  %v711_v25 = vld [vmem:[#allocation5 + $0x38] sm:$0xff]  ;;  %v709_v30 = vld [vmem:[#allocation5 + $0x28] sm:$0xff] }
  0x25   :  { %v321_v47 = vor.u32 %v320_v38, %v317_v36  ;;  %v325_v48 = vor.u32 %v324_v40, %v323_v39  ;;  %v331_v10 = vrot.slane %v329_v43, 5  ;;  %v417_v51 = vunpack.c.l.b16 %v401_v42  ;;  %566 = vmatpush.bf16.msrb.mxu1 %v711_v25  ;;  %v707_v38 = vld [vmem:[#allocation5 + $0x18] sm:$0xff]  ;;  %v464_v42 = vld [vmem:[%s1003_s2] sm:$0xff] }
  0x26   :  { %646 = vmatmul.msk.bf16.vlgmr.msra.gmra.mxu3 %vm138_vm0, %v346_v41  ;;  %v334_v49 = vrot.slane %v332_v44, 6  ;;  %v418_v52 = vunpack.c.l.b16 %v404_v46  ;;  %v243_v54 = vpack.c.b16 %v240_v45, %v239_v37  ;;  %v229_v55 = vrot.slane %v845_v5, 5  ;;  %v706_v43 = vld [vmem:[#allocation5 + $0x10] sm:$0xff]  ;;  %v465_v45 = vld [vmem:[%s1003_s2 + $0x8] sm:$0xff] }
  0x27   :  { %v322_v50 = vrot.slane %v321_v47, 4  ;;  %v327_v9 = vrot.slane %v325_v48, 4  ;;  %v627_v59 = vrot.slane %v928_v18, 9  ;;  %v407_v60 = vrot.slane %v845_v5, 6 }
  0x28   :  { %v335_v53 = vor.u32 %v334_v49, %v331_v10  ;;  %v421_v58 = vpack.c.b16 %v418_v52, %v417_v51  ;;  %v231_v63 = vrot.slane %v229_v55, 4  ;;  %v232_v0 = vrot.slane %v850_v6, 5 }
  0x29   :  { %v326_v56 = vsel %vm910_vm9, %v322_v50, %v325_v48  ;;  %v649_v1 = vrot.slane %v390_v2, 10  ;;  %v409_v3 = vrot.slane %v407_v60, 4  ;;  %v410_v4 = vrot.slane %v287_v31, 6  ;;  %567 = vmatpush.bf16.msrb.mxu1 %v710_v27  ;;  %v705_v48 = vld [vmem:[#allocation5 + $0x8] sm:$0xff] }
  0x2a   :  { %v336_v57 = vsel %vm910_vm9, %v327_v9, %v335_v53  ;;  %v344_v61 = vunpack.c.l.b16 %v326_v56  ;;  %v230_v8 = vsel %vm920_vm10, %v627_v59, %v229_v55  ;;  %v233_v5 = vsel %vm920_vm10, %v231_v63, %v232_v0  ;;  %v704_v55 = vld [vmem:[#allocation5] sm:$0xff] }
  0x2b   :  { %v345_v62 = vunpack.c.l.b16 %v336_v57  ;;  %v241_v11 = vunpack.c.l.b16 %v230_v8  ;;  %v242_v12 = vunpack.c.l.b16 %v233_v5  ;;  %v408_v6 = vsel %vm941_vm12, %v649_v1, %v407_v60 }
  0x2c   :  { %v411_v13 = vsel %vm941_vm12, %v409_v3, %v410_v4  ;;  %v419_v15 = vunpack.c.l.b16 %v408_v6  ;;  %vm514_vm13 = vcmask 1041409  }
  0x2d   :  { %636 = vmatmul.msk.bf16.vlgmr.msrb.gmra.mxu2 %vm138_vm0, %v243_v54  ;;  %v347_v7 = vpack.c.b16 %v345_v62, %v344_v61  ;;  %v420_v18 = vunpack.c.l.b16 %v411_v13  ;;  %v244_v19 = vpack.c.b16 %v242_v12, %v241_v11  ;;  %568 = vmatpush.bf16.msrb.mxu1 %v709_v30 }
  0x2f   :  { %v422_v20 = vpack.c.b16 %v420_v18, %v419_v15 }
  0x30   :  { %658 = vmatmul.msk.bf16.vlgmr.msrb.gmra.mxu0 %vm138_vm0, %v421_v58 }
  0x31   :  { %569 = vmatpush.bf16.msrb.mxu1 %v708_v32 }
  0x35   :  { %570 = vmatpush.bf16.msrb.mxu1 %v707_v38 }
  0x36   :  { %647 = vmatmul.msk.bf16.gmra.mxu3 %vm138_vm0, %v347_v7 }
  0x39   :  { %571 = vmatpush.bf16.msrb.mxu1 %v706_v43 }
  0x3d   :  { %637 = vmatmul.msk.bf16.gmra.mxu2 %vm138_vm0, %v244_v19  ;;  %572 = vmatpush.bf16.msrb.mxu1 %v705_v48 }
  0x40   :  { %659 = vmatmul.msk.bf16.gmra.mxu0 %vm138_vm0, %v422_v20 }
  0x41   :  { %573 = vmatpush.bf16.msrb.mxu1 %v704_v55 }
  0x91   :  { %v201_v23 = vpop.f32.mrf.mxu1 }
  0x99   :  { %v203_v17 = vpop.f32.mrf.mxu1 }
  0x9d   :  { %v154_v14 = vpop.f32.mrf.mxu0 }
  0x9e   :  { %v202_v29 = vadd.f32 %v201_v23, %v154_v14 }
  0xa0   :  { %v159_v21 = vpop.f32.mrf.mxu2 }
  0xa1   :  { %v206_v41 = vpop.f32.mrf.mxu1 }
  0xa2   :  { %v207_v10 = vadd.f32 %v206_v41, %v159_v21 }
  0xa5   :  { %v156_v22 = vpop.f32.mrf.mxu0 }
  0xa6   :  { %v204_v35 = vadd.f32 %v203_v17, %v156_v22  ;;  %v719_v17 = vld [vmem:[%s1005_s4] ss:$0 sm:$0xff] }
  0xa8   :  { %v161_v24 = vpop.f32.mrf.mxu2 }
  0xa9   :  { %v375_v26 = vpop.f32.mrf.mxu3  ;;  %v208_v57 = vpop.f32.mrf.mxu1 }
  0xaa   :  { %v209_v59 = vadd.f32 %v208_v57, %v161_v24 }
  0xad   :  { %v450_v28 = vpop.f32.mrf.mxu0 }
  0xb0   :  { %v272_v16 = vpop.f32.mrf.mxu2 }
  0xb1   :  { %v282_v31 = vadd.f32 %v272_v16, %v202_v29  ;;  %v377_v34 = vpop.f32.mrf.mxu3 }
  0xb3   :  { %v385_v33 = vadd.f32 %v375_v26, %v282_v31 }
  0xb5   :  { %v452_v36 = vpop.f32.mrf.mxu0  ;;  %v460_v39 = vadd.f32 %v450_v28, %v385_v33 }
  0xb7   :  { %v466_v46 = vadd.f32 %v464_v42, %v460_v39 }
  0xb8   :  { %v274_v37 = vpop.f32.mrf.mxu2 }
  0xb9   :  { %v283_v40 = vadd.f32 %v274_v37, %v204_v35  ;;  %v380_v50 = vpop.f32.mrf.mxu3  ;;  %v470_v51 = vmax.f32 %v466_v46, 0.0 }
  0xbb   :  { %v386_v44 = vadd.f32 %v377_v34, %v283_v40 }
  0xbd   :  { %v461_v47 = vadd.f32 %v452_v36, %v386_v44  ;;  %v455_v54 = vpop.f32.mrf.mxu0 }
  0xbf   :  { %v467_v49 = vadd.f32 %v465_v45, %v461_v47 }
  0xc0   :  { %v277_v9 = vpop.f32.mrf.mxu2 }
  0xc1   :  { %v471_v52 = vmax.f32 %v467_v49, 0.0  ;;  %v284_v53 = vadd.f32 %v277_v9, %v207_v10  ;;  %v382_v0 = vpop.f32.mrf.mxu3 }
  0xc3   :  { %v474_v56 = vmax.f32 %v470_v51, %v471_v52  ;;  %v387_v58 = vadd.f32 %v380_v50, %v284_v53 }
  0xc5   :  { %v475_v60 = vrot.slane %v474_v56, 4  ;;  %v462_v62 = vadd.f32 %v455_v54, %v387_v58  ;;  %v457_v3 = vpop.f32.mrf.mxu0 }
  0xc7   :  { %v476_v2 = vmax.f32 %v474_v56, %v475_v60  ;;  %v468_v4 = vadd.f32 %v464_v42, %v462_v62 }
  0xc8   :  { %v279_v61 = vpop.f32.mrf.mxu2 }
  0xc9   :  { %v285_v63 = vadd.f32 %v279_v61, %v209_v59  ;;  %v477_v8 = vrot.slane %v476_v2, 2  ;;  %v472_v11 = vmax.f32 %v468_v4, 0.0 }
  0xcb   :  { %v388_v1 = vadd.f32 %v382_v0, %v285_v63  ;;  %v478_v13 = vmax.f32 %v476_v2, %v477_v8 }
  0xcd   :  { %v463_v7 = vadd.f32 %v457_v3, %v388_v1  ;;  %v479_v19 = vrot.slane %v478_v13, 1 }
  0xcf   :  { %v469_v5 = vadd.f32 %v465_v45, %v463_v7  ;;  %v480_v14 = vmax.f32 %v478_v13, %v479_v19 }
  0xd1   :  { %v473_v12 = vmax.f32 %v469_v5, 0.0  ;;  %v488_v24 = vpack.c.bf16 %v480_v14, %v480_v14 }
  0xd3   :  { %v481_v6 = vmax.f32 %v472_v11, %v473_v12  ;;  %v512_v26 = vunpack.c.l.b16 %v488_v24 }
  0xd5   :  { %v482_v15 = vrot.slane %v481_v6, 4 }
  0xd7   :  { %v483_v18 = vmax.f32 %v481_v6, %v482_v15 }
  0xd9   :  { %v484_v20 = vrot.slane %v483_v18, 2 }
  0xdb   :  { %v485_v21 = vmax.f32 %v483_v18, %v484_v20 }
  0xdd   :  { %v486_v22 = vrot.slane %v485_v21, 1 }
  0xdf   :  { %v487_v23 = vmax.f32 %v485_v21, %v486_v22 }
  0xe1   :  { %v489_v25 = vpack.c.bf16 %v487_v23, %v487_v23 }
  0xe3   :  { %v513_v27 = vunpack.c.l.b16 %v489_v25 }
  0xe5   :  { %v515_v28 = vsel %vm514_vm13, %v513_v27, %v512_v26 }
  0xe6   :  { %v516_v29 = vpack.c.b16 %v515_v28, %v515_v28 }
  0xe8   :  { %574 = vmatmul.bf16.vlgmr.msrb.gmra.mxu1 %v516_v29 }
 0x165   :  { %v575_v16 = vpop.f32.mrf.mxu1 }
 0x166   :  { %v576_v30 = vadd.f32 %v719_v17, %v575_v16 }
 0x168   :  { %579 = vst [vmem:[#allocation7] sm:$0x3] %v576_v30 }
 0x169   :  { %590 = dma.vmem_to_hbm [thread:$0]  %s586_s9, 32, %s588_s12, [#allocation4]  }
 0x16d   :  { %v577_v31 = vpop.f32.mrf.mxu1 }
 0x16e   :  { %796 = dma.done.wait [#allocation4], 32  }
 0x16f   :  { %797 = vsyncadd [#allocation4], 4294967264 }
 0x170   :  { %595 = vsyncpa [#allocation3], 1 }
 0x171   :  { %596 = vsyncpa [#allocation6], 1 }
 0x172   :  { %597 = vsyncpa [#allocation4], 1 }

</bundles_post_ra>
